<compile_context>
chip_gen: v7x
topology: tpu7x:2x2x1
jax: 0.10.0
libtpu: 0.0.40
codegen_flags: <defaults>
</compile_context>

<pallas_src>
import functools

import jax
import jax.numpy as jnp
from jax.experimental import pallas as pl
from jax.experimental.pallas import tpu as pltpu


def _dsconv_kernel(x_ref, wdw_ref, wpw_ref, b_ref, o_ref, *,
                   k_size, padding, length, use_mxu):
    # x_ref  : (B, C_in, S)   activations in native layout (S = per-element length)
    # wdw_ref: (C_in, K)      depthwise weights (one K-tap filter per channel)
    # wpw_ref: (C_out, C_in)  pointwise (1x1 conv) weights
    # b_ref  : (C_out, 1)     effective bias = b_pw + w_pw @ b_dw
    # o_ref  : (B, C_out, S)
    b_tile, c_in, s = x_ref.shape
    c_out = o_ref.shape[1]

    x = x_ref[...].astype(jnp.float32)           # (B, C_in, S)
    wdw = wdw_ref[...].astype(jnp.float32)       # (C_in, K)

    # Depthwise conv: K taps as XLU rolls of the slab + VPU FMAs.  Tap k of output
    # column p reads input column p + (k - padding); boundary taps get a one-sided
    # iota mask that implements the conv's zero padding (interior taps skip the
    # select entirely).  Rolls act on the last axis, i.e. per batch element.
    pos = None                                   # lazily-built (1, 1, S) iota
    acc = jnp.zeros((b_tile, c_in, s), jnp.float32)
    for k in range(k_size):
        off = k - padding                        # input col = output col + off
        shift = (-off) % s
        xk = x if shift == 0 else pltpu.roll(x, shift, axis=2)
        term = wdw[:, k:k + 1][None, :, :] * xk  # (B, C_in, S)

        lo_needed = off < 0                      # cols p < -off would read x[<0]
        hi_needed = off > length - s             # high cols would read past length
        if lo_needed or hi_needed:
            if pos is None:
                pos = jax.lax.broadcasted_iota(jnp.int32, (1, 1, s), 2)
            if lo_needed and hi_needed:
                valid = (pos >= -off) & (pos < length - off)
            elif lo_needed:
                valid = pos >= -off
            else:
                valid = pos < length - off
            term = jnp.where(valid, term, 0.0)
        acc = acc + term

    bias = b_ref[...].astype(jnp.float32)        # (C_out, 1)

    if use_mxu:
        # Pointwise 1x1 conv on the MXU (bf16 inputs, f32 accumulation) so it overlaps
        # with the VALU-bound depthwise stage; one matmul per batch element avoids any
        # in-kernel 3-D transposes.
        wpw_mx = wpw_ref[...].astype(jnp.bfloat16)           # (C_out, C_in)
        for bi in range(b_tile):
            yb = jnp.dot(wpw_mx, acc[bi].astype(jnp.bfloat16),
                         preferred_element_type=jnp.float32)  # (C_out, S)
            yb = yb + bias
            yb = jnp.where(yb > 0.0, yb, 0.1 * yb)            # LeakyReLU(0.1)
            o_ref[bi] = yb.astype(o_ref.dtype)
    else:
        # Tiny channel counts: unrolled broadcast-FMAs on the VPU.
        wpw = wpw_ref[...].astype(jnp.float32)               # (C_out, C_in)
        y = jnp.zeros((b_tile, c_out, s), jnp.float32)
        for c in range(c_in):
            y = y + wpw[:, c:c + 1][None, :, :] * acc[:, c:c + 1, :]
        y = y + bias[None, :, :]
        y = jnp.where(y > 0.0, y, 0.1 * y)                    # LeakyReLU(0.1)
        o_ref[...] = y.astype(o_ref.dtype)


def _vmem_capacity_bytes():
    """Physical VMEM of the current generation; conservative fallback = v7x (64 MiB)."""
    try:
        cap = int(pltpu.get_tpu_info().vmem_capacity_bytes)
        if cap > 0:
            return cap
    except Exception:
        pass
    return 64 * 2 ** 20


def _block_footprint(d, s, c_in, c_out, in_isz, out_isz):
    # Double-buffered in/out blocks + f32 in-kernel temporaries (x, rolled copy, acc, y)
    # counted at 4 bytes/elem regardless of the I/O itemsize.
    io = 2 * d * s * (c_in * in_isz + c_out * out_isz)
    temps = 4 * d * s * (3 * c_in + 2 * c_out)
    return io + temps


def _choose_batch_tile(n, s, c_in, c_out, in_isz, out_isz, budget):
    """Batch elements per grid step.

    Prefer >= 2 grid steps (so v7x's two TensorCores both get work), then the largest
    tile that fits the generation-aware VMEM budget (bigger blocks amortize the
    ~0.35 us per-grid-step overhead and keep DMAs near the HBM roofline).
    """
    divs = [d for d in range(1, n + 1) if n % d == 0]
    pref = [d for d in divs if d <= n // 2] or divs
    fitting = [d for d in pref
               if _block_footprint(d, s, c_in, c_out, in_isz, out_isz) <= budget]
    if fitting:
        return max(fitting)
    # TODO(synk): huge-L / tiny-N configs need intra-sequence L tiling with a halo.
    return 1


def depthwise_separable_conv1d(x, w_dw, b_dw, w_pw, b_pw, *, padding):
    """x: (N, C_in, L). Returns (N, C_out, L_out) matching the PyTorch module."""
    n, c_in, l = x.shape
    c_out = w_pw.shape[0]
    k_size = w_dw.shape[-1]
    l_out = l + 2 * padding - k_size + 1
    assert l_out >= 1

    # Per-element length inside the kernel.  For the usual case (l_out <= l, e.g.
    # 'same' conv) no padding at all is needed; only over-padded configs pad up to l_out.
    s = max(l, l_out)
    x_s = x if s == l else jnp.pad(x, ((0, 0), (0, 0), (0, s - l)))

    # Fold depthwise bias into the pointwise bias: Wpw @ (dw + b_dw) + b_pw.
    b_eff = (b_pw.astype(jnp.float32)
             + w_pw.astype(jnp.float32) @ b_dw.astype(jnp.float32)).reshape(c_out, 1)

    cap = _vmem_capacity_bytes()
    budget = cap // 3
    in_isz = x.dtype.itemsize
    out_isz = x.dtype.itemsize
    b_tile = _choose_batch_tile(n, s, c_in, c_out, in_isz, out_isz, budget)
    grid = (n // b_tile,)

    use_mxu = (c_in >= 16 and c_out >= 16)

    kernel = functools.partial(
        _dsconv_kernel, k_size=k_size, padding=padding, length=l, use_mxu=use_mxu)

    fp = _block_footprint(b_tile, s, c_in, c_out, in_isz, out_isz)
    vmem_limit = int(min(cap * 3 // 4, max(16 * 2 ** 20, 2 * fp)))

    grid_spec = pltpu.PrefetchScalarGridSpec(
        num_scalar_prefetch=0,
        grid=grid,
        in_specs=[
            pl.BlockSpec((b_tile, c_in, s), lambda i: (i, 0, 0)),
            pl.BlockSpec((c_in, k_size), lambda i: (0, 0)),
            pl.BlockSpec((c_out, c_in), lambda i: (0, 0)),
            pl.BlockSpec((c_out, 1), lambda i: (0, 0)),
        ],
        out_specs=pl.BlockSpec((b_tile, c_out, s), lambda i: (i, 0, 0)),
    )

    y = pl.pallas_call(
        kernel,
        out_shape=jax.ShapeDtypeStruct((n, c_out, s), x.dtype),
        grid_spec=grid_spec,
        compiler_params=pltpu.CompilerParams(
            dimension_semantics=("parallel",),
            vmem_limit_bytes=vmem_limit),
    )(x_s, w_dw, w_pw, b_eff)

    return y if l_out == s else y[:, :, :l_out]


def _reference(x, w_dw, b_dw, w_pw, b_pw, padding):
    """Pure-JAX reference matching nn.Conv1d(groups=C) -> nn.Conv1d(k=1) -> LeakyReLU."""
    n, c_in, l = x.shape
    k = w_dw.shape[-1]
    l_out = l + 2 * padding - k + 1
    x_pad = jnp.pad(x, ((0, 0), (0, 0), (padding, padding)))
    dw = jnp.zeros((n, c_in, l_out), jnp.float32)
    for kk in range(k):
        dw = dw + w_dw[None, :, kk:kk + 1] * x_pad[:, :, kk:kk + l_out]
    dw = dw + b_dw[None, :, None]
    pw = jnp.einsum("oc,ncl->nol", w_pw, dw) + b_pw[None, :, None]
    return jnp.where(pw > 0, pw, 0.1 * pw)


def _make_params(key, c_in, c_out, k_size):
    k1, k2, k3, k4 = jax.random.split(key, 4)
    bound_dw = 1.0 / (1 * k_size) ** 0.5          # groups=C -> fan_in = 1*K
    w_dw = jax.random.uniform(k1, (c_in, k_size), minval=-bound_dw, maxval=bound_dw,
                              dtype=jnp.float32)
    b_dw = jax.random.uniform(k2, (c_in,), minval=-bound_dw, maxval=bound_dw,
                              dtype=jnp.float32)
    bound_pw = 1.0 / (c_in * 1) ** 0.5
    w_pw = jax.random.uniform(k3, (c_out, c_in), minval=-bound_pw, maxval=bound_pw,
                              dtype=jnp.float32)
    b_pw = jax.random.uniform(k4, (c_out,), minval=-bound_pw, maxval=bound_pw,
                              dtype=jnp.float32)
    return w_dw, b_dw, w_pw, b_pw


if __name__ == "__main__":
    key = jax.random.PRNGKey(0)
    k_main, k_mid, k_pad = jax.random.split(key, 3)

    # --- Module config: in_channels=4, out_channels=8, kernel_size=3, padding=1 ---
    kx, kp = jax.random.split(k_main)
    x = jax.random.normal(kx, (2, 4, 16), dtype=jnp.float32)
    w_dw, b_dw, w_pw, b_pw = _make_params(kp, 4, 8, 3)
    out = depthwise_separable_conv1d(x, w_dw, b_dw, w_pw, b_pw, padding=1)
    out = jax.block_until_ready(out)
    ref = _reference(x, w_dw, b_dw, w_pw, b_pw, 1)
    assert out.shape == (2, 8, 16), out.shape
    assert jnp.allclose(out, ref, atol=1e-5, rtol=1e-5), "mismatch (VPU path)"

    # --- Mid-size config: exercises the MXU pointwise path and a >=2-step grid ---
    kx, kp = jax.random.split(k_mid)
    x2 = jax.random.normal(kx, (4, 32, 256), dtype=jnp.float32)
    p2 = _make_params(kp, 32, 32, 3)
    out2 = jax.block_until_ready(
        depthwise_separable_conv1d(x2, *p2, padding=1))
    ref2 = _reference(x2, *p2, 1)
    assert out2.shape == (4, 32, 256), out2.shape
    assert jnp.allclose(out2, ref2, atol=3e-2, rtol=3e-2), "mismatch (MXU/bf16 path)"

    # --- Over-padded config (l_out > l): exercises the wrapper pad + mask edge cases ---
    kx, kp = jax.random.split(k_pad)
    x3 = jax.random.normal(kx, (2, 4, 16), dtype=jnp.float32)
    p3 = _make_params(kp, 4, 8, 5)
    out3 = jax.block_until_ready(
        depthwise_separable_conv1d(x3, *p3, padding=3))
    ref3 = _reference(x3, *p3, 3)
    assert out3.shape == (2, 8, 18), out3.shape
    assert jnp.allclose(out3, ref3, atol=1e-5, rtol=1e-5), "mismatch (over-padded path)"

    print("KERNEL_OK")
</pallas_src>

<mosaic_0001>
module attributes {stable_mosaic.version = 11 : i64} {
  func.func @_dsconv_kernel(%arg0: i32, %arg1: memref<1x4x16xf32, #tpu.memory_space<vmem>>, %arg2: memref<4x3xf32, #tpu.memory_space<vmem>>, %arg3: memref<8x4xf32, #tpu.memory_space<vmem>>, %arg4: memref<8x1xf32, #tpu.memory_space<vmem>>, %arg5: memref<1x8x16xf32, #tpu.memory_space<vmem>>) attributes {dimension_semantics = [#tpu.dimension_semantics<parallel>], iteration_bounds = array<i64: 2>, scalar_prefetch = 0 : i64, scratch_operands = 0 : i64, tpu.core_type = #tpu.core_type<tc>, window_params = [{transform_indices = @transform_0, window_bounds = array<i64: 1, 4, 16>}, {pipeline_mode = #tpu.pipeline_mode<synchronous>, transform_indices = @transform_1, window_bounds = array<i64: 4, 3>}, {pipeline_mode = #tpu.pipeline_mode<synchronous>, transform_indices = @transform_2, window_bounds = array<i64: 8, 4>}, {pipeline_mode = #tpu.pipeline_mode<synchronous>, transform_indices = @transform_3, window_bounds = array<i64: 8, 1>}, {transform_indices = @transform_4, window_bounds = array<i64: 1, 8, 16>}]} {
    %c0 = arith.constant 0 : index
    %c0_0 = arith.constant 0 : index
    %c0_1 = arith.constant 0 : index
    %0 = vector.load %arg1[%c0, %c0_0, %c0_1] : memref<1x4x16xf32, #tpu.memory_space<vmem>>, vector<1x4x16xf32>
    %c0_2 = arith.constant 0 : index
    %c0_3 = arith.constant 0 : index
    %1 = vector.load %arg2[%c0_2, %c0_3] : memref<4x3xf32, #tpu.memory_space<vmem>>, vector<4x3xf32>
    %cst = arith.constant 0.000000e+00 : f32
    %2 = vector.broadcast %cst : f32 to vector<1x4x16xf32>
    %c1_i32 = arith.constant 1 : i32
    %3 = tpu.dynamic_rotate %0 by %c1_i32 dim 2 : vector<1x4x16xf32>, i32 -> vector<1x4x16xf32>
    %4 = vector.extract_strided_slice %1 {offsets = [0, 0], sizes = [4, 1], strides = [1, 1]} : vector<4x3xf32> to vector<4x1xf32>
    %5 = vector.shape_cast %4 : vector<4x1xf32> to vector<1x4x1xf32>
    %6 = vector.broadcast %5 : vector<1x4x1xf32> to vector<1x4x16xf32>
    %7 = arith.mulf %6, %3 : vector<1x4x16xf32>
    %8 = tpu.iota {dimensions = array<i32: 2>} : vector<1x1x16xi32>
    %c1_i32_4 = arith.constant 1 : i32
    %9 = vector.broadcast %c1_i32_4 : i32 to vector<1x1x16xi32>
    %10 = arith.cmpi sge, %8, %9 : vector<1x1x16xi32>
    %cst_5 = arith.constant 0.000000e+00 : f32
    %11 = vector.shape_cast %10 : vector<1x1x16xi1> to vector<1x1x16xi1>
    %12 = vector.broadcast %11 : vector<1x1x16xi1> to vector<1x4x16xi1>
    %13 = vector.broadcast %cst_5 : f32 to vector<1x4x16xf32>
    %14 = arith.select %12, %7, %13 : vector<1x4x16xi1>, vector<1x4x16xf32>
    %15 = arith.addf %2, %14 : vector<1x4x16xf32>
    %16 = vector.extract_strided_slice %1 {offsets = [0, 1], sizes = [4, 1], strides = [1, 1]} : vector<4x3xf32> to vector<4x1xf32>
    %17 = vector.shape_cast %16 : vector<4x1xf32> to vector<1x4x1xf32>
    %18 = vector.broadcast %17 : vector<1x4x1xf32> to vector<1x4x16xf32>
    %19 = arith.mulf %18, %0 : vector<1x4x16xf32>
    %20 = arith.addf %15, %19 : vector<1x4x16xf32>
    %c15_i32 = arith.constant 15 : i32
    %21 = tpu.dynamic_rotate %0 by %c15_i32 dim 2 : vector<1x4x16xf32>, i32 -> vector<1x4x16xf32>
    %22 = vector.extract_strided_slice %1 {offsets = [0, 2], sizes = [4, 1], strides = [1, 1]} : vector<4x3xf32> to vector<4x1xf32>
    %23 = vector.shape_cast %22 : vector<4x1xf32> to vector<1x4x1xf32>
    %24 = vector.broadcast %23 : vector<1x4x1xf32> to vector<1x4x16xf32>
    %25 = arith.mulf %24, %21 : vector<1x4x16xf32>
    %c15_i32_6 = arith.constant 15 : i32
    %26 = vector.broadcast %c15_i32_6 : i32 to vector<1x1x16xi32>
    %27 = arith.cmpi slt, %8, %26 : vector<1x1x16xi32>
    %cst_7 = arith.constant 0.000000e+00 : f32
    %28 = vector.shape_cast %27 : vector<1x1x16xi1> to vector<1x1x16xi1>
    %29 = vector.broadcast %28 : vector<1x1x16xi1> to vector<1x4x16xi1>
    %30 = vector.broadcast %cst_7 : f32 to vector<1x4x16xf32>
    %31 = arith.select %29, %25, %30 : vector<1x4x16xi1>, vector<1x4x16xf32>
    %32 = arith.addf %20, %31 : vector<1x4x16xf32>
    %c0_8 = arith.constant 0 : index
    %c0_9 = arith.constant 0 : index
    %33 = vector.load %arg4[%c0_8, %c0_9] : memref<8x1xf32, #tpu.memory_space<vmem>>, vector<8x1xf32>
    %c0_10 = arith.constant 0 : index
    %c0_11 = arith.constant 0 : index
    %34 = vector.load %arg3[%c0_10, %c0_11] : memref<8x4xf32, #tpu.memory_space<vmem>>, vector<8x4xf32>
    %cst_12 = arith.constant 0.000000e+00 : f32
    %35 = vector.broadcast %cst_12 : f32 to vector<1x8x16xf32>
    %36 = vector.extract_strided_slice %34 {offsets = [0, 0], sizes = [8, 1], strides = [1, 1]} : vector<8x4xf32> to vector<8x1xf32>
    %37 = vector.shape_cast %36 : vector<8x1xf32> to vector<1x8x1xf32>
    %38 = vector.extract_strided_slice %32 {offsets = [0, 0, 0], sizes = [1, 1, 16], strides = [1, 1, 1]} : vector<1x4x16xf32> to vector<1x1x16xf32>
    %39 = vector.broadcast %37 : vector<1x8x1xf32> to vector<1x8x16xf32>
    %40 = vector.broadcast %38 : vector<1x1x16xf32> to vector<1x8x16xf32>
    %41 = arith.mulf %39, %40 : vector<1x8x16xf32>
    %42 = arith.addf %35, %41 : vector<1x8x16xf32>
    %43 = vector.extract_strided_slice %34 {offsets = [0, 1], sizes = [8, 1], strides = [1, 1]} : vector<8x4xf32> to vector<8x1xf32>
    %44 = vector.shape_cast %43 : vector<8x1xf32> to vector<1x8x1xf32>
    %45 = vector.extract_strided_slice %32 {offsets = [0, 1, 0], sizes = [1, 1, 16], strides = [1, 1, 1]} : vector<1x4x16xf32> to vector<1x1x16xf32>
    %46 = vector.broadcast %44 : vector<1x8x1xf32> to vector<1x8x16xf32>
    %47 = vector.broadcast %45 : vector<1x1x16xf32> to vector<1x8x16xf32>
    %48 = arith.mulf %46, %47 : vector<1x8x16xf32>
    %49 = arith.addf %42, %48 : vector<1x8x16xf32>
    %50 = vector.extract_strided_slice %34 {offsets = [0, 2], sizes = [8, 1], strides = [1, 1]} : vector<8x4xf32> to vector<8x1xf32>
    %51 = vector.shape_cast %50 : vector<8x1xf32> to vector<1x8x1xf32>
    %52 = vector.extract_strided_slice %32 {offsets = [0, 2, 0], sizes = [1, 1, 16], strides = [1, 1, 1]} : vector<1x4x16xf32> to vector<1x1x16xf32>
    %53 = vector.broadcast %51 : vector<1x8x1xf32> to vector<1x8x16xf32>
    %54 = vector.broadcast %52 : vector<1x1x16xf32> to vector<1x8x16xf32>
    %55 = arith.mulf %53, %54 : vector<1x8x16xf32>
    %56 = arith.addf %49, %55 : vector<1x8x16xf32>
    %57 = vector.extract_strided_slice %34 {offsets = [0, 3], sizes = [8, 1], strides = [1, 1]} : vector<8x4xf32> to vector<8x1xf32>
    %58 = vector.shape_cast %57 : vector<8x1xf32> to vector<1x8x1xf32>
    %59 = vector.extract_strided_slice %32 {offsets = [0, 3, 0], sizes = [1, 1, 16], strides = [1, 1, 1]} : vector<1x4x16xf32> to vector<1x1x16xf32>
    %60 = vector.broadcast %58 : vector<1x8x1xf32> to vector<1x8x16xf32>
    %61 = vector.broadcast %59 : vector<1x1x16xf32> to vector<1x8x16xf32>
    %62 = arith.mulf %60, %61 : vector<1x8x16xf32>
    %63 = arith.addf %56, %62 : vector<1x8x16xf32>
    %64 = vector.shape_cast %33 : vector<8x1xf32> to vector<1x8x1xf32>
    %65 = vector.broadcast %64 : vector<1x8x1xf32> to vector<1x8x16xf32>
    %66 = arith.addf %63, %65 : vector<1x8x16xf32>
    %cst_13 = arith.constant 0.000000e+00 : f32
    %67 = vector.broadcast %cst_13 : f32 to vector<1x8x16xf32>
    %68 = arith.cmpf ogt, %66, %67 : vector<1x8x16xf32>
    %cst_14 = arith.constant 1.000000e-01 : f32
    %69 = vector.broadcast %cst_14 : f32 to vector<1x8x16xf32>
    %70 = arith.mulf %69, %66 : vector<1x8x16xf32>
    %71 = arith.select %68, %66, %70 : vector<1x8x16xi1>, vector<1x8x16xf32>
    %c0_15 = arith.constant 0 : index
    %c0_16 = arith.constant 0 : index
    %c0_17 = arith.constant 0 : index
    %72 = vector.load %arg5[%c0_15, %c0_16, %c0_17] : memref<1x8x16xf32, #tpu.memory_space<vmem>>, vector<1x8x16xf32>
    tpu.vector_store %arg5[%c0_15, %c0_16, %c0_17], %71 {strides = array<i32>} : memref<1x8x16xf32, #tpu.memory_space<vmem>>, vector<1x8x16xf32>,
    return
  }
  func.func @transform_0(%arg0: i32) -> (i32, i32, i32) {
    %c0_i32 = arith.constant 0 : i32
    %c0_i32_0 = arith.constant 0 : i32
    %c0_i32_1 = arith.constant 0 : i32
    return %arg0, %c0_i32, %c0_i32_0 : i32, i32, i32
  }
  func.func @transform_1(%arg0: i32) -> (i32, i32) {
    %c0_i32 = arith.constant 0 : i32
    %c0_i32_0 = arith.constant 0 : i32
    %c0_i32_1 = arith.constant 0 : i32
    return %c0_i32, %c0_i32_0 : i32, i32
  }
  func.func @transform_2(%arg0: i32) -> (i32, i32) {
    %c0_i32 = arith.constant 0 : i32
    %c0_i32_0 = arith.constant 0 : i32
    %c0_i32_1 = arith.constant 0 : i32
    return %c0_i32, %c0_i32_0 : i32, i32
  }
  func.func @transform_3(%arg0: i32) -> (i32, i32) {
    %c0_i32 = arith.constant 0 : i32
    %c0_i32_0 = arith.constant 0 : i32
    %c0_i32_1 = arith.constant 0 : i32
    return %c0_i32, %c0_i32_0 : i32, i32
  }
  func.func @transform_4(%arg0: i32) -> (i32, i32, i32) {
    %c0_i32 = arith.constant 0 : i32
    %c0_i32_0 = arith.constant 0 : i32
    %c0_i32_1 = arith.constant 0 : i32
    return %arg0, %c0_i32, %c0_i32_0 : i32, i32, i32
  }
}

</mosaic_0001>

<bundles_post_ra>
// kernel: tpu_custom_call.1
= control target key start
LH: loop header
LB: loop body
LE: loop exit
PB: predicated region body
PF: predicated region fallthrough
CT: control target
= control target key end

     0   :  { %9 = vsyncpa [#allocation3], 0  ;;  %s637_s0 = inlined_call_operand.vmem [shape: f32[2,4,16], index: 0, kind: input, shape index: {}]   ;;  %s638_s1 = inlined_call_operand.vmem [shape: f32[4,3], index: 1, kind: input, shape index: {}]   ;;  %s639_s2 = inlined_call_operand.vmem [shape: f32[8,4], index: 2, kind: input, shape index: {}]   ;;  %s640_s3 = inlined_call_operand.vmem [shape: f32[8,1], index: 3, kind: input, shape index: {}]   ;;  %s641_s4 = inlined_call_operand.hbm [shape: f32[2,8,16], index: 4, kind: output, shape index: {}]  }
   0x1   :  { %11 = vsyncpa [#allocation3 + $0x1], 0  ;;  %s528_s15 = smov 0   ;;  %s530_s16 = smov 0  }
   0x2   :  { %s532_s17 = smov 0   ;;  %s534_s18 = smov 0  }
   0x3 LB: > { %s549_s19 = sadd.s32 4294967295, %s493_s18   ;;  %s366_s20 = sadd.s32 4294967294, %s493_s18   ;;  %s493_s18 = sphi %s534_s18, %s647_s18   ;;  %s489_s17 = sphi %s532_s17, %s646_s17   ;;  %s485_s16 = sphi %s530_s16, %s645_s16   ;;  %s481_s15 = sphi %s528_s15, %s644_s15  }
   0x4   : > { %s553_s21 = sadd.s32 1, %s493_s18   ;;  %s113_s22 = sadd.s32 1, %s489_s17 }
   0x5   : > { %s110_s23 = ssub.s32 %s493_s18, %s553_s21  ;;  %p123_p0 = scmp.ne.s32.totalorder %s489_s17, %s485_s16 }
   0x6   : > { %p111_p1 = scmp.eq.s32.totalorder %s110_s23, 0  ;;  %p124_p2 = scmp.eq.s32.totalorder %s549_s19, 1 }
   0x7   : > { %p129_p3 = scmp.ne.s32.totalorder %s485_s16, %s481_s15  ;;  %p130_p4 = scmp.eq.s32.totalorder %s366_s20, 1 }
   0x8   : > { %s564_s24 = scalar_select %p111_p1, %s489_s17, %s113_s22  }
   0x9   : > { %p566_p5 = por %p124_p2, %p123_p0  ;;  %p570_p6 = por %p130_p4, %p129_p3 }
   0xa   : > { %p369_p7 = scmp.ge.s32.totalorder %s493_s18, 1  ;;  %p164_p8 = scmp.lt.s32.totalorder %s493_s18, 3 }
   0xc   : > { %p165_p9 = pnand %p369_p7, %p164_p8 }
   0xd   : > { %p189_p10 = scmp.lt.s32.totalorder (!%p165_p9), %s549_s19, 1  ;;  %v194_v0 = vld [vmem:[%s638_s1] sm:$0xf] (!%p165_p9)  ;;  %v495_v1 = vmov (!%p165_p9), 2   ;;  %v496_v2 = vmov (!%p165_p9), 0   ;;  %v497_v4 = vmov (!%p165_p9), 1   ;;  %v208_v17 = vlaneseq (!%p165_p9) }
   0xe   : > { %168 = sbr.rel (%p165_p9) target bundleno = 417 (0x1a1), region = 36  ;;  %423 = vset.pattern.permute.xlu1 (!%p165_p9), %v495_v1  ;;  %422 = vset.pattern.permute.xlu0 (!%p165_p9), %v496_v2  ;;  %s498_s8 = smov (!%p165_p9), 16   ;;  %v240_v5 = vld [vmem:[%s639_s2] sm:$0xff] (!%p165_p9)  ;;  %v499_v6 = vmov (!%p165_p9), 3   ;;  %vm195_vm0 = vcmask (!%p165_p9), 1047680   ;;  %vm291_vm4 = vcmask (!%p165_p9), 130048  }
   0xf   : > { %226 = vperm.xlu1 (!%p165_p9), %423, %v194_v0   ;;  %s500_s11 = smov (!%p165_p9), 127   ;;  %s501_s12 = smov (!%p165_p9), 113   ;;  %v239_v15 = vld [vmem:[%s640_s3] sm:$0xff] (!%p165_p9)  ;;  %v209_v19 = vand.u32 (!%p165_p9), 127, %v208_v17  ;;  %v247_v24 = vshrl.u32 (!%p165_p9), %v208_v17, 7 }
  0x10   : > { %s186_s20 = sand.u32 (!%p165_p9), 1, %s485_s16   ;;  %s373_s23 = sshll.u32 (!%p165_p9), %s549_s19, 7 }
  0x11   : > { %vm210_vm1 = vcmp.ge.s32.totalorder (!%p165_p9), %v209_v19, 1  ;;  %vm230_vm2 = vcmp.lt.s32.totalorder (!%p165_p9), %v209_v19, 15  ;;  %v248_v29 = vsub.s32 (!%p165_p9), 0, %v247_v24  ;;  %v258_v30 = vsub.s32 (!%p165_p9), 1, %v247_v24  ;;  %s370_s22 = sshll.u32 (!%p165_p9), %s186_s20, 3  ;;  %s595_s5 = scalar_lea.hbm (!%p165_p9), %s641_s4, %s373_s23 }
  0x12   : > { %v268_v33 = vsub.s32 (!%p165_p9), 2, %v247_v24  ;;  %v278_v36 = vsub.s32 (!%p165_p9), 3, %v247_v24  ;;  %s188_s27 = scalar_lea.vmem (!%p165_p9), [#allocation2], %s370_s22  ;;  %s294_s6 = scalar_lea.sflag (!%p165_p9), [#allocation3], %s186_s20 }
  0x13   : > { %424 = vset.pattern.permute.xlu1 (!%p165_p9), %v497_v4  ;;  %s307_s28 = sshll.u32 (!%p165_p9), %s188_s27, 4  ;;  %s597_s28 = int_to_ptr.vmem [resolvable:$true] %s307_s28 }
  0x15   : > { %s190_s29 = scalar_select %p189_p10, %s549_s19, 1 }
  0x16   : > { %s502_s19 = smov [#allocation2]  }
  0x17   : > { %s371_s30 = sshll.u32 %s190_s29, 2 }
  0x18   : > { %s192_s7 = scalar_lea.vmem %s637_s0, %s371_s30 }
  0x19   : > { %v193_v3 = vld [vmem:[%s192_s7] sm:$0xf]  ;;  %s431_s7 = scalar_lea.vmem %s597_s28, 128 }
  0x1a   : > { %196 = vrot.lane.b32.xlu0 %v193_v3, %s498_s8  ;;  %p432_p11 = scmp.ne.s32.totalorder %s597_s28, %s431_s7 }
  0x1c   : > { %p433_p12 = pnand %p432_p11, %p566_p5 }
  0x1e   : > { %204 = vperm.xlu0 %422, %v194_v0   ;;  %p434_p13 = pneg %p433_p12 }
  0x22   : > { %426 = vset.pattern.permute.xlu0 %v497_v4 }
  0x23   : > { %253 = vperm.xlu0 %426, %v240_v5  }
  0x27   : > { %428 = vset.pattern.permute.xlu0 %v499_v6 }
  0x8c   : > { %v197_v7 = vpop.permute.xlu0 %196 }
  0x8d   : > { %v198_v8 = vsel %vm195_vm0, %v197_v7, %v193_v3 }
  0x8e   : > { %199 = vrot.lane.b32.xlu1 %v198_v8, %s498_s8  ;;  %v227_v9 = vpop.permute.xlu1 %226  ;;  %s435_s8 = sshll.u32 %s502_s19, 4  ;;  %s436_s8 = int_to_ptr.vmem [resolvable:$false] %s435_s8 }
  0x8f   : > { %s437_s9 = scalar_lea.vmem %s436_s8, 256  ;;  %p438_p0 = scmp.lt.s32.totalorder %s597_s28, %s436_s8 }
  0x90   : > { %p439_p1 = scmp.lt.s32.totalorder %s437_s9, %s431_s7 }
  0x92   : > { %220 = vperm.xlu1 %424, %v194_v0   ;;  %p440_p2 = por %p439_p1, %p438_p0 }
  0x94   : > { %p441_p3 = pnand %p440_p2, %p434_p13 }
  0x96   : > { %425 = vset.pattern.permute.xlu1 %v496_v2 }
  0x97   : > { %243 = vperm.xlu1 %425, %v240_v5  }
  0x9b   : > { %427 = vset.pattern.permute.xlu1 %v495_v1 }
  0x9d   : > { %v205_v10 = vpop.permute.xlu0 %204 }
  0xa2   : > { %v254_v18 = vpop.permute.xlu0 %253 }
 0x100   : > { %v200_v11 = vpop.permute.xlu1 %199 }
 0x101   : > { %v201_v12 = vsel %vm195_vm0, %v200_v11, %v193_v3 }
 0x102   : > { %v229_v13 = vmul.f32 %v227_v9, %v201_v12  ;;  %v207_v14 = vmul.f32 %v205_v10, %v201_v12 }
 0x104   : > { %234 = vrot.lane.b32.xlu1 %v229_v13, %s500_s11  ;;  %214 = vrot.lane.b32.xlu0 %v207_v14, %s501_s12 }
 0x108   : > { %263 = vperm.xlu1 %427, %v240_v5   ;;  %273 = vperm.xlu0 %428, %v240_v5  }
 0x10c   : > { %429 = vset.pattern.permute.xlu1 %v496_v2  ;;  %430 = vset.pattern.permute.xlu0 %v496_v2 }
 0x10d   : > { %284 = vperm.xlu1 %429, %v239_v15  }
 0x111   : > { %v221_v16 = vpop.permute.xlu1 %220 }
 0x112   : > { %v223_v21 = vmul.f32 %v221_v16, %v193_v3 }
 0x116   : > { %v244_v20 = vpop.permute.xlu1 %243 }
 0x176   : > { %v215_v22 = vpop.permute.xlu0 %214  ;;  %v235_v25 = vpop.permute.xlu1 %234 }
 0x177   : > { %v217_v23 = vsel %vm210_vm1, %v215_v22, 0.0  ;;  %v237_v27 = vsel %vm230_vm2, %v235_v25, 0.0 }
 0x178   : > { %v224_v26 = vadd.f32 %v223_v21, %v217_v23 }
 0x17a   : > { %v238_v28 = vadd.f32 %v237_v27, %v224_v26 }
 0x17c   : > { %v249_v31 = vrot.slane %v238_v28, %v248_v29  ;;  %v259_v32 = vrot.slane %v238_v28, %v258_v30  ;;  %v269_v37 = vrot.slane %v238_v28, %v268_v33  ;;  %v279_v42 = vrot.slane %v238_v28, %v278_v36 }
 0x17e   : > { %v250_v34 = vmul.f32 %v249_v31, %v244_v20  ;;  %v260_v35 = vmul.f32 %v259_v32, %v254_v18 }
 0x180   : > { %v261_v40 = vadd.f32 %v260_v35, %v250_v34 }
 0x187   : > { %v264_v38 = vpop.permute.xlu1 %263  ;;  %v274_v39 = vpop.permute.xlu0 %273 }
 0x188   : > { %v270_v41 = vmul.f32 %v269_v37, %v264_v38  ;;  %v280_v44 = vmul.f32 %v279_v42, %v274_v39 }
 0x18a   : > { %v271_v43 = vadd.f32 %v270_v41, %v261_v40 }
 0x18c   : > { %v285_v45 = vpop.permute.xlu1 %284  ;;  %v281_v46 = vadd.f32 %v280_v44, %v271_v43 }
 0x18e   : > { %v287_v47 = vadd.f32 %v285_v45, %v281_v46 }
 0x190   : > { %vm288_vm3 = vcmp.gt.f32.partialorder %v287_v47, 0.0  ;;  %v289_v48 = vmul.f32 0.1, %v287_v47 }
 0x192   : > { %v290_v49 = vsel %vm288_vm3, %v287_v47, %v289_v48 }
 0x193   : > { %292 = vst.msk [vmem:[%s188_s27] sm:$0xff] %vm291_vm4, %v290_v49 }
 0x194   : > { %444 = shalt.err (!%p441_p3)
}
 0x195   : > { %s445_s10 = scalar_lea.hbm %s595_s5, 128  ;;  %s449_s13 = scalar_lea.hbm %s641_s4, 256 }
 0x196   : > { %p446_p4 = scmp.ne.s32.totalorder %s595_s5, %s445_s10  ;;  %p450_p9 = scmp.lt.u32.totalorder %s595_s5, %s641_s4 }
 0x197   : > { %p451_p10 = scmp.lt.u32.totalorder %s449_s13, %s445_s10  ;;  %p453_p12 = scmp.lt.u32.totalorder %s445_s10, %s595_s5 }
 0x198   : > { %p447_p7 = pnand %p446_p4, %p566_p5 }
 0x199   : > { %p452_p11 = por %p451_p10, %p450_p9 }
 0x19a   : > { %p448_p8 = pneg %p447_p7 }
 0x19b   : > { %p454_p13 = por %p453_p12, %p452_p11 }
 0x19d   : > { %p455_p0 = pnand %p454_p13, %p448_p8 }
 0x19f   : > { %458 = shalt.err (!%p455_p0)
}
 0x1a0   : > { %376 = dma.vmem_to_hbm [thread:$0]  (%p566_p5), %s597_s28, 128, %s595_s5, %s294_s6  }
 0x1a1 PF: > { %p382_p1 = scmp.ge.s32.totalorder %s493_s18, 2  ;;  %s319_s22 = sand.u32 1, %s481_s15  }
 0x1a2   : > { %s320_s23 = scalar_lea.sflag [#allocation3], %s319_s22 }
 0x1a3   : > { %p379_p2 = pnand %p382_p1, %p570_p6 }
 0x1a5   : > { %476 = dma.done.wait (!%p379_p2), %s320_s23, 128  }
 0x1a6   : > { %478 = vsyncadd (!%p379_p2), %s320_s23, 4294967168  ;;  %p14_p3 = scmp.ge.s32.totalorder %s553_s21, 4   ;;  %s644_s15 = smov %s485_s16 }
 0x1a7   : > { %s645_s16 = smov %s489_s17  ;;  %s646_s17 = smov %s564_s24 }
 0x1a8   : > { %s647_s18 = smov %s553_s21  ;;  %16 = sbr.rel (!%p14_p3) target bundleno = 3 (0x3), region = 71 }
 0x1af   :  { %325 = vsyncpa [#allocation3], 1 }
 0x1b0   :  { %327 = vsyncpa [#allocation3 + $0x1], 1 }

</bundles_post_ra>
